<compile_context>
chip_gen: v7x
topology: tpu7x:2x2x1
jax: 0.10.0
libtpu: 0.0.40
codegen_flags: <defaults>
</compile_context>

<pallas_src>
import numpy as np
import jax
import jax.numpy as jnp
from jax.experimental import pallas as pl
from jax.experimental.pallas import tpu as pltpu

classes = ('airplane', 'bird', 'car', 'cat', 'deer',
           'dog', 'horse', 'monkey', 'ship', 'truck')
NUM_CLASSES = len(classes)

IMG_H = IMG_W = 16          # spatial size of the small self-contained test input
OUT_LANES = 128             # lane-dense (padded) classifier output width


# ---------------------------------------------------------------------------
# Fused kernel: conv1+ReLU+pool -> conv2+ReLU+pool -> flatten -> Linear
# Layout: rows = (batch, y), lanes = (x, channel).
# ---------------------------------------------------------------------------
def _make_stl10_kernel(tile_b, img_h, img_w):
    h1 = img_h // 2
    h2 = img_h // 4
    f32, bf16 = jnp.float32, jnp.bfloat16

    def dot32(a, b):
        return jnp.dot(a, b, preferred_element_type=f32)

    def kernel(x_ref, w1_ref, b1_ref, ps1_ref, w2_ref, b2_ref, ps2_ref,
               fw_ref, fb_ref, out_ref, s1_ref, s2_ref, p2_ref):

        def conv3x3_relu(a, h, w_ref, b_ref):
            # a: [tile_b*h, w*ci] f32.  dy = ±1 neighbour rows come from an XLU roll plus a
            # VPU boundary mask (zero padding at image top/bottom); dx zero padding is folded
            # into the banded weight matrices.  3 MXU matmuls, bf16 operands, f32 accumulate.
            rows = a.shape[0]
            y_idx = jax.lax.broadcasted_iota(jnp.int32, (rows, 1), 0) % h
            up = jnp.where(y_idx == 0, 0.0, pltpu.roll(a, 1, axis=0))
            dn = jnp.where(y_idx == h - 1, 0.0, pltpu.roll(a, rows - 1, axis=0))
            z = (dot32(up.astype(bf16), w_ref[0])
                 + dot32(a.astype(bf16), w_ref[1])
                 + dot32(dn.astype(bf16), w_ref[2]))
            return jnp.maximum(z + b_ref[...], 0.0)            # f32 [rows, w*co]

        def maxpool2x2(z, z_scratch, ps_ref):
            # rows: sublane-strided reads (no MXU); lanes: two 0/1 selection matmuls.
            z_scratch[...] = z
            half = z.shape[0] // 2
            m = jnp.maximum(z_scratch[pl.ds(0, half, stride=2), :],
                            z_scratch[pl.ds(1, half, stride=2), :]).astype(bf16)
            return jnp.maximum(dot32(m, ps_ref[0]), dot32(m, ps_ref[1]))   # f32

        a1 = conv3x3_relu(x_ref[0], img_h, w1_ref, b1_ref)      # [TB*16, 128]
        p1 = maxpool2x2(a1, s1_ref, ps1_ref)                    # [TB*8,   64]
        a2 = conv3x3_relu(p1, h1, w2_ref, b2_ref)               # [TB*8,  128]
        p2 = maxpool2x2(a2, s2_ref, ps2_ref)                    # [TB*4,   64]

        # classifier: gather the per-y rows of each image (strided sublane reads), lane-concat
        # into one [TB, H2*W2*C2] slab, single lane-dense matmul against [256, 128] weights.
        p2_ref[...] = p2
        fc_in = jnp.concatenate(
            [p2_ref[pl.ds(y, tile_b, stride=h2), :] for y in range(h2)], axis=1)
        out_ref[0] = dot32(fc_in.astype(bf16), fw_ref[...]) + fb_ref[...]

    return kernel


def stl10_forward(packed, x, *, tile_b=1):
    b, cin, h, w = x.shape
    assert b % tile_b == 0, (b, tile_b)
    nt = b // tile_b
    c1 = packed['b1'].shape[1] // w
    c2 = packed['b2'].shape[1] // (w // 2)
    n_lanes = packed['fw'].shape[1]

    # single layout transform of the raw input: NCHW -> [tile, (b_local, y), (x, ci)]
    x3d = (jnp.transpose(x, (0, 2, 3, 1))
             .reshape(nt, tile_b * h, w * cin)
             .astype(jnp.float32))

    kernel = _make_stl10_kernel(tile_b, h, w)
    grid_spec = pltpu.PrefetchScalarGridSpec(
        num_scalar_prefetch=0,
        grid=(nt,),
        in_specs=[
            pl.BlockSpec((1, tile_b * h, w * cin), lambda i: (i, 0, 0)),
            pl.BlockSpec(packed['w1'].shape, lambda i: (0, 0, 0)),
            pl.BlockSpec(packed['b1'].shape, lambda i: (0, 0)),
            pl.BlockSpec(packed['ps1'].shape, lambda i: (0, 0, 0)),
            pl.BlockSpec(packed['w2'].shape, lambda i: (0, 0, 0)),
            pl.BlockSpec(packed['b2'].shape, lambda i: (0, 0)),
            pl.BlockSpec(packed['ps2'].shape, lambda i: (0, 0, 0)),
            pl.BlockSpec(packed['fw'].shape, lambda i: (0, 0)),
            pl.BlockSpec(packed['fb'].shape, lambda i: (0, 0)),
        ],
        out_specs=pl.BlockSpec((1, tile_b, n_lanes), lambda i: (i, 0, 0)),
        scratch_shapes=[
            pltpu.VMEM((tile_b * h, w * c1), jnp.float32),                 # conv1 out
            pltpu.VMEM((tile_b * (h // 2), (w // 2) * c2), jnp.float32),   # conv2 out
            pltpu.VMEM((tile_b * (h // 4), (w // 4) * c2), jnp.float32),   # pool2 out
        ],
    )
    out = pl.pallas_call(
        kernel,
        out_shape=jax.ShapeDtypeStruct((nt, tile_b, n_lanes), jnp.float32),
        grid_spec=grid_spec,
        compiler_params=pltpu.CompilerParams(dimension_semantics=("parallel",)),
    )(x3d,
      packed['w1'], packed['b1'], packed['ps1'],
      packed['w2'], packed['b2'], packed['ps2'],
      packed['fw'], packed['fb'])
    return out.reshape(b, n_lanes)[:, :NUM_CLASSES]


stl10_forward_jit = jax.jit(stl10_forward, static_argnames=("tile_b",))


# ---------------------------------------------------------------------------
# One-time weight packing (numpy, outside the jit hot loop).  Batch-agnostic.
# ---------------------------------------------------------------------------
def _band_conv_weights(w, width):
    # w: [Cout, Cin, 3, 3] -> banded [3, width*Cin, width*Cout]; zero outside the band
    # implements x-direction zero padding.
    cout, cin, _, _ = w.shape
    wb = np.zeros((3, width * cin, width * cout), np.float32)
    for ky in range(3):
        for xo in range(width):
            for kx in range(3):
                xi = xo + kx - 1
                if 0 <= xi < width:
                    wb[ky, xi * cin:(xi + 1) * cin,
                       xo * cout:(xo + 1) * cout] = w[:, :, ky, kx].T
    return wb


def _pool_lane_select(width, ch):
    # 0/1 lane-selection matrices picking x = 2*xo + rx; exact in bf16.
    wo = width // 2
    ps = np.zeros((2, width * ch, wo * ch), np.float32)
    for rx in range(2):
        for k in range(wo * ch):
            xo, c = divmod(k, ch)
            ps[rx, (2 * xo + rx) * ch + c, k] = 1.0
    return ps


def _pack_fc(fc_w, fc_b, ch, height, width, n_lanes):
    # fc_w: [num_classes, ch*height*width] in PyTorch NCHW flatten order (c, y, x).
    # Packed for the kernel's (y, x, c) lane-concatenated layout, lane-padded to n_lanes.
    ncls = fc_w.shape[0]
    fw = np.zeros((height * width * ch, n_lanes), np.float32)
    for y in range(height):
        for x in range(width):
            for c in range(ch):
                fw[y * width * ch + x * ch + c, :ncls] = \
                    fc_w[:, c * height * width + y * width + x]
    fb = np.zeros((1, n_lanes), np.float32)
    fb[0, :ncls] = fc_b
    return fw, fb


def pack_params(params, n_lanes=OUT_LANES):
    w1 = np.asarray(params['conv1_w'], np.float32)
    b1 = np.asarray(params['conv1_b'], np.float32)
    w2 = np.asarray(params['conv2_w'], np.float32)
    b2 = np.asarray(params['conv2_b'], np.float32)
    fcw = np.asarray(params['fc_w'], np.float32)
    fcb = np.asarray(params['fc_b'], np.float32)

    c1, c2 = w1.shape[0], w2.shape[0]
    h0, w0 = IMG_H, IMG_W            # conv1 spatial size
    h1, w1s = h0 // 2, w0 // 2       # conv2 spatial size (after pool1)
    h2, w2s = h1 // 2, w1s // 2      # classifier spatial size (after pool2)

    fw, fb = _pack_fc(fcw, fcb, c2, h2, w2s, n_lanes)
    packed_np = {
        'w1': _band_conv_weights(w1, w0), 'b1': np.tile(b1, w0).reshape(1, -1),
        'ps1': _pool_lane_select(w0, c1),
        'w2': _band_conv_weights(w2, w1s), 'b2': np.tile(b2, w1s).reshape(1, -1),
        'ps2': _pool_lane_select(w1s, c2),
        'fw': fw, 'fb': fb,
    }
    bf16_keys = {'w1', 'ps1', 'w2', 'ps2', 'fw'}   # matmul operands -> bf16; biases stay f32
    return {k: jnp.asarray(v, jnp.bfloat16 if k in bf16_keys else jnp.float32)
            for k, v in packed_np.items()}


# ---------------------------------------------------------------------------
# Params + pure-JAX references of the PyTorch module (correctness checks)
# ---------------------------------------------------------------------------
def init_params(key):
    k = jax.random.split(key, 6)
    c1, c2 = 8, 16
    cin = 4
    n_channel = c2 * (IMG_H // 4) * (IMG_W // 4)   # 16*4*4 = 256
    return {
        'conv1_w': 0.1 * jax.random.normal(k[0], (c1, cin, 3, 3), jnp.float32),
        'conv1_b': 0.1 * jax.random.normal(k[1], (c1,), jnp.float32),
        'conv2_w': 0.1 * jax.random.normal(k[2], (c2, c1, 3, 3), jnp.float32),
        'conv2_b': 0.1 * jax.random.normal(k[3], (c2,), jnp.float32),
        'fc_w':    0.1 * jax.random.normal(k[4], (NUM_CLASSES, n_channel), jnp.float32),
        'fc_b':    0.1 * jax.random.normal(k[5], (NUM_CLASSES,), jnp.float32),
    }


def stl10_reference(params, x, bf16_matmuls=False):
    mm_dtype = jnp.bfloat16 if bf16_matmuls else jnp.float32

    def conv_relu(t, w, b):
        y = jax.lax.conv_general_dilated(
            t.astype(mm_dtype), w.astype(mm_dtype), window_strides=(1, 1),
            padding=((1, 1), (1, 1)), dimension_numbers=('NCHW', 'OIHW', 'NCHW'),
            preferred_element_type=jnp.float32)
        return jax.nn.relu(y + b[None, :, None, None])

    def pool(t):
        b, c, h, w = t.shape
        return t.reshape(b, c, h // 2, 2, w // 2, 2).max(axis=(3, 5))

    t = pool(conv_relu(x, params['conv1_w'], params['conv1_b']))
    t = pool(conv_relu(t, params['conv2_w'], params['conv2_b']))
    t = t.reshape(t.shape[0], -1)
    return jnp.dot(t.astype(mm_dtype), params['fc_w'].T.astype(mm_dtype),
                   preferred_element_type=jnp.float32) + params['fc_b']


if __name__ == "__main__":
    key = jax.random.PRNGKey(0)
    kx, kp = jax.random.split(key)
    x = jax.random.normal(kx, (2, 4, IMG_H, IMG_W), jnp.float32)   # NCHW input
    params = init_params(kp)
    packed = pack_params(params)          # one-time packing, batch-agnostic, outside jit

    logits = stl10_forward_jit(packed, x)
    logits = jax.block_until_ready(logits)

    assert logits.shape == (x.shape[0], NUM_CLASSES), logits.shape
    assert logits.dtype == jnp.float32

    # structural check vs a reference that also uses bf16 matmul operands (tight tolerance)
    ref_bf16 = jax.block_until_ready(stl10_reference(params, x, bf16_matmuls=True))
    err_bf16 = float(jnp.max(jnp.abs(logits - ref_bf16)))
    assert err_bf16 < 2e-2, f"kernel vs bf16-operand reference: max|diff|={err_bf16}"

    # semantic check vs the full-f32 PyTorch-equivalent reference (bf16-operand tolerance)
    with jax.default_matmul_precision("highest"):
        ref_f32 = jax.block_until_ready(stl10_reference(params, x, bf16_matmuls=False))
    err_f32 = float(jnp.max(jnp.abs(logits - ref_f32)))
    assert err_f32 < 1e-1, f"kernel vs f32 reference: max|diff|={err_f32}"

    print("KERNEL_OK")
</pallas_src>

<mosaic_0001>
module attributes {stable_mosaic.version = 11 : i64} {
  func.func @kernel(%arg0: i32, %arg1: memref<1x16x64xf32, #tpu.memory_space<vmem>>, %arg2: memref<3x64x128xbf16, #tpu.memory_space<vmem>>, %arg3: memref<1x128xf32, #tpu.memory_space<vmem>>, %arg4: memref<2x128x64xbf16, #tpu.memory_space<vmem>>, %arg5: memref<3x64x128xbf16, #tpu.memory_space<vmem>>, %arg6: memref<1x128xf32, #tpu.memory_space<vmem>>, %arg7: memref<2x128x64xbf16, #tpu.memory_space<vmem>>, %arg8: memref<256x128xbf16, #tpu.memory_space<vmem>>, %arg9: memref<1x128xf32, #tpu.memory_space<vmem>>, %arg10: memref<1x1x128xf32, #tpu.memory_space<vmem>>, %arg11: memref<16x128xf32, #tpu.memory_space<vmem>>, %arg12: memref<8x128xf32, #tpu.memory_space<vmem>>, %arg13: memref<4x64xf32, #tpu.memory_space<vmem>>) attributes {dimension_semantics = [#tpu.dimension_semantics<parallel>], iteration_bounds = array<i64: 2>, scalar_prefetch = 0 : i64, scratch_operands = 3 : i64, tpu.core_type = #tpu.core_type<tc>, window_params = [{transform_indices = @transform_0, window_bounds = array<i64: 1, 16, 64>}, {pipeline_mode = #tpu.pipeline_mode<synchronous>, transform_indices = @transform_1, window_bounds = array<i64: 3, 64, 128>}, {pipeline_mode = #tpu.pipeline_mode<synchronous>, transform_indices = @transform_2, window_bounds = array<i64: 1, 128>}, {pipeline_mode = #tpu.pipeline_mode<synchronous>, transform_indices = @transform_3, window_bounds = array<i64: 2, 128, 64>}, {pipeline_mode = #tpu.pipeline_mode<synchronous>, transform_indices = @transform_4, window_bounds = array<i64: 3, 64, 128>}, {pipeline_mode = #tpu.pipeline_mode<synchronous>, transform_indices = @transform_5, window_bounds = array<i64: 1, 128>}, {pipeline_mode = #tpu.pipeline_mode<synchronous>, transform_indices = @transform_6, window_bounds = array<i64: 2, 128, 64>}, {pipeline_mode = #tpu.pipeline_mode<synchronous>, transform_indices = @transform_7, window_bounds = array<i64: 256, 128>}, {pipeline_mode = #tpu.pipeline_mode<synchronous>, transform_indices = @transform_8, window_bounds = array<i64: 1, 128>}, {transform_indices = @transform_9, window_bounds = array<i64: 1, 1, 128>}]} {
    %c0 = arith.constant 0 : index
    %c0_0 = arith.constant 0 : index
    %c0_1 = arith.constant 0 : index
    %0 = vector.load %arg1[%c0, %c0_0, %c0_1] : memref<1x16x64xf32, #tpu.memory_space<vmem>>, vector<1x16x64xf32>
    %1 = vector.shape_cast %0 : vector<1x16x64xf32> to vector<16x64xf32>
    %2 = tpu.iota {dimensions = array<i32: 0>} : vector<16x1xi32>
    %c16_i32 = arith.constant 16 : i32
    %c0_i32 = arith.constant 0 : i32
    %3 = arith.cmpi eq, %c16_i32, %c0_i32 : i32
    %c1_i32 = arith.constant 1 : i32
    %4 = arith.select %3, %c1_i32, %c16_i32 : i32
    %5 = vector.broadcast %4 : i32 to vector<16x1xi32>
    %6 = arith.remsi %2, %5 : vector<16x1xi32>
    %c0_i32_2 = arith.constant 0 : i32
    %7 = vector.broadcast %c0_i32_2 : i32 to vector<16x1xi32>
    %8 = arith.cmpi ne, %6, %7 : vector<16x1xi32>
    %c0_i32_3 = arith.constant 0 : i32
    %9 = vector.broadcast %c0_i32_3 : i32 to vector<16x1xi32>
    %10 = arith.cmpi slt, %6, %9 : vector<16x1xi32>
    %c0_i32_4 = arith.constant 0 : i32
    %11 = arith.cmpi slt, %4, %c0_i32_4 : i32
    %12 = vector.broadcast %11 : i1 to vector<16x1xi1>
    %13 = vector.broadcast %12 : vector<16x1xi1> to vector<16x1xi1>
    %14 = arith.xori %10, %13 : vector<16x1xi1>
    %15 = arith.andi %14, %8 : vector<16x1xi1>
    %16 = vector.broadcast %4 : i32 to vector<16x1xi32>
    %17 = arith.addi %6, %16 : vector<16x1xi32>
    %18 = arith.select %15, %17, %6 : vector<16x1xi1>, vector<16x1xi32>
    %c0_i32_5 = arith.constant 0 : i32
    %19 = vector.broadcast %c0_i32_5 : i32 to vector<16x1xi32>
    %20 = arith.cmpi eq, %18, %19 : vector<16x1xi32>
    %c1_i32_6 = arith.constant 1 : i32
    %21 = tpu.dynamic_rotate %1 by %c1_i32_6 dim 0 : vector<16x64xf32>, i32 -> vector<16x64xf32>
    %cst = arith.constant 0.000000e+00 : f32
    %22 = vector.shape_cast %20 : vector<16x1xi1> to vector<16x1xi1>
    %23 = vector.broadcast %22 : vector<16x1xi1> to vector<16x64xi1>
    %24 = vector.broadcast %cst : f32 to vector<16x64xf32>
    %25 = arith.select %23, %24, %21 : vector<16x64xi1>, vector<16x64xf32>
    %c15_i32 = arith.constant 15 : i32
    %26 = vector.broadcast %c15_i32 : i32 to vector<16x1xi32>
    %27 = arith.cmpi eq, %18, %26 : vector<16x1xi32>
    %c15_i32_7 = arith.constant 15 : i32
    %28 = tpu.dynamic_rotate %1 by %c15_i32_7 dim 0 : vector<16x64xf32>, i32 -> vector<16x64xf32>
    %cst_8 = arith.constant 0.000000e+00 : f32
    %29 = vector.shape_cast %27 : vector<16x1xi1> to vector<16x1xi1>
    %30 = vector.broadcast %29 : vector<16x1xi1> to vector<16x64xi1>
    %31 = vector.broadcast %cst_8 : f32 to vector<16x64xf32>
    %32 = arith.select %30, %31, %28 : vector<16x64xi1>, vector<16x64xf32>
    %33 = arith.truncf %25 : vector<16x64xf32> to vector<16x64xbf16>
    %c0_9 = arith.constant 0 : index
    %c0_10 = arith.constant 0 : index
    %c0_11 = arith.constant 0 : index
    %34 = vector.load %arg2[%c0_9, %c0_10, %c0_11] : memref<3x64x128xbf16, #tpu.memory_space<vmem>>, vector<1x64x128xbf16>
    %35 = vector.shape_cast %34 : vector<1x64x128xbf16> to vector<64x128xbf16>
    %cst_12 = arith.constant dense<0.000000e+00> : vector<16x128xf32>
    %36 = tpu.matmul %33, %35, %cst_12 {dimension_numbers = #tpu.dot_dimension_numbers<[1], [0], [0], [1], [0, 0, 1, 1], [], []>} : vector<16x64xbf16>, vector<64x128xbf16>, vector<16x128xf32> -> vector<16x128xf32>
    %37 = arith.truncf %1 : vector<16x64xf32> to vector<16x64xbf16>
    %c1 = arith.constant 1 : index
    %c0_13 = arith.constant 0 : index
    %c0_14 = arith.constant 0 : index
    %38 = vector.load %arg2[%c1, %c0_13, %c0_14] : memref<3x64x128xbf16, #tpu.memory_space<vmem>>, vector<1x64x128xbf16>
    %39 = vector.shape_cast %38 : vector<1x64x128xbf16> to vector<64x128xbf16>
    %cst_15 = arith.constant dense<0.000000e+00> : vector<16x128xf32>
    %40 = tpu.matmul %37, %39, %cst_15 {dimension_numbers = #tpu.dot_dimension_numbers<[1], [0], [0], [1], [0, 0, 1, 1], [], []>} : vector<16x64xbf16>, vector<64x128xbf16>, vector<16x128xf32> -> vector<16x128xf32>
    %41 = arith.addf %36, %40 : vector<16x128xf32>
    %42 = arith.truncf %32 : vector<16x64xf32> to vector<16x64xbf16>
    %c2 = arith.constant 2 : index
    %c0_16 = arith.constant 0 : index
    %c0_17 = arith.constant 0 : index
    %43 = vector.load %arg2[%c2, %c0_16, %c0_17] : memref<3x64x128xbf16, #tpu.memory_space<vmem>>, vector<1x64x128xbf16>
    %44 = vector.shape_cast %43 : vector<1x64x128xbf16> to vector<64x128xbf16>
    %cst_18 = arith.constant dense<0.000000e+00> : vector<16x128xf32>
    %45 = tpu.matmul %42, %44, %cst_18 {dimension_numbers = #tpu.dot_dimension_numbers<[1], [0], [0], [1], [0, 0, 1, 1], [], []>} : vector<16x64xbf16>, vector<64x128xbf16>, vector<16x128xf32> -> vector<16x128xf32>
    %46 = arith.addf %41, %45 : vector<16x128xf32>
    %c0_19 = arith.constant 0 : index
    %c0_20 = arith.constant 0 : index
    %47 = vector.load %arg3[%c0_19, %c0_20] : memref<1x128xf32, #tpu.memory_space<vmem>>, vector<1x128xf32>
    %48 = vector.broadcast %47 : vector<1x128xf32> to vector<16x128xf32>
    %49 = arith.addf %46, %48 : vector<16x128xf32>
    %cst_21 = arith.constant 0.000000e+00 : f32
    %50 = vector.broadcast %cst_21 : f32 to vector<16x128xf32>
    %51 = arith.maximumf %49, %50 : vector<16x128xf32>
    %c0_22 = arith.constant 0 : index
    %c0_23 = arith.constant 0 : index
    %52 = vector.load %arg11[%c0_22, %c0_23] : memref<16x128xf32, #tpu.memory_space<vmem>>, vector<16x128xf32>
    tpu.vector_store %arg11[%c0_22, %c0_23], %51 {strides = array<i32>} : memref<16x128xf32, #tpu.memory_space<vmem>>, vector<16x128xf32>,
    %c0_24 = arith.constant 0 : index
    %c0_25 = arith.constant 0 : index
    %53 = tpu.strided_load %arg11[%c0_24, %c0_25] {strides = array<i32: 2, 1>} : memref<16x128xf32, #tpu.memory_space<vmem>>, vector<8x128xf32>
    %c1_26 = arith.constant 1 : index
    %c0_27 = arith.constant 0 : index
    %54 = tpu.strided_load %arg11[%c1_26, %c0_27] {strides = array<i32: 2, 1>} : memref<16x128xf32, #tpu.memory_space<vmem>>, vector<8x128xf32>
    %55 = arith.maximumf %53, %54 : vector<8x128xf32>
    %56 = arith.truncf %55 : vector<8x128xf32> to vector<8x128xbf16>
    %c0_28 = arith.constant 0 : index
    %c0_29 = arith.constant 0 : index
    %c0_30 = arith.constant 0 : index
    %57 = vector.load %arg4[%c0_28, %c0_29, %c0_30] : memref<2x128x64xbf16, #tpu.memory_space<vmem>>, vector<1x128x64xbf16>
    %58 = vector.shape_cast %57 : vector<1x128x64xbf16> to vector<128x64xbf16>
    %cst_31 = arith.constant dense<0.000000e+00> : vector<8x64xf32>
    %59 = tpu.matmul %56, %58, %cst_31 {dimension_numbers = #tpu.dot_dimension_numbers<[1], [0], [0], [1], [0, 0, 1, 1], [], []>} : vector<8x128xbf16>, vector<128x64xbf16>, vector<8x64xf32> -> vector<8x64xf32>
    %c1_32 = arith.constant 1 : index
    %c0_33 = arith.constant 0 : index
    %c0_34 = arith.constant 0 : index
    %60 = vector.load %arg4[%c1_32, %c0_33, %c0_34] : memref<2x128x64xbf16, #tpu.memory_space<vmem>>, vector<1x128x64xbf16>
    %61 = vector.shape_cast %60 : vector<1x128x64xbf16> to vector<128x64xbf16>
    %cst_35 = arith.constant dense<0.000000e+00> : vector<8x64xf32>
    %62 = tpu.matmul %56, %61, %cst_35 {dimension_numbers = #tpu.dot_dimension_numbers<[1], [0], [0], [1], [0, 0, 1, 1], [], []>} : vector<8x128xbf16>, vector<128x64xbf16>, vector<8x64xf32> -> vector<8x64xf32>
    %63 = arith.maximumf %59, %62 : vector<8x64xf32>
    %64 = tpu.iota {dimensions = array<i32: 0>} : vector<8x1xi32>
    %c8_i32 = arith.constant 8 : i32
    %c0_i32_36 = arith.constant 0 : i32
    %65 = arith.cmpi eq, %c8_i32, %c0_i32_36 : i32
    %c1_i32_37 = arith.constant 1 : i32
    %66 = arith.select %65, %c1_i32_37, %c8_i32 : i32
    %67 = vector.broadcast %66 : i32 to vector<8x1xi32>
    %68 = arith.remsi %64, %67 : vector<8x1xi32>
    %c0_i32_38 = arith.constant 0 : i32
    %69 = vector.broadcast %c0_i32_38 : i32 to vector<8x1xi32>
    %70 = arith.cmpi ne, %68, %69 : vector<8x1xi32>
    %c0_i32_39 = arith.constant 0 : i32
    %71 = vector.broadcast %c0_i32_39 : i32 to vector<8x1xi32>
    %72 = arith.cmpi slt, %68, %71 : vector<8x1xi32>
    %c0_i32_40 = arith.constant 0 : i32
    %73 = arith.cmpi slt, %66, %c0_i32_40 : i32
    %74 = vector.broadcast %73 : i1 to vector<8x1xi1>
    %75 = vector.broadcast %74 : vector<8x1xi1> to vector<8x1xi1>
    %76 = arith.xori %72, %75 : vector<8x1xi1>
    %77 = arith.andi %76, %70 : vector<8x1xi1>
    %78 = vector.broadcast %66 : i32 to vector<8x1xi32>
    %79 = arith.addi %68, %78 : vector<8x1xi32>
    %80 = arith.select %77, %79, %68 : vector<8x1xi1>, vector<8x1xi32>
    %c0_i32_41 = arith.constant 0 : i32
    %81 = vector.broadcast %c0_i32_41 : i32 to vector<8x1xi32>
    %82 = arith.cmpi eq, %80, %81 : vector<8x1xi32>
    %c1_i32_42 = arith.constant 1 : i32
    %83 = tpu.dynamic_rotate %63 by %c1_i32_42 dim 0 : vector<8x64xf32>, i32 -> vector<8x64xf32>
    %cst_43 = arith.constant 0.000000e+00 : f32
    %84 = vector.shape_cast %82 : vector<8x1xi1> to vector<8x1xi1>
    %85 = vector.broadcast %84 : vector<8x1xi1> to vector<8x64xi1>
    %86 = vector.broadcast %cst_43 : f32 to vector<8x64xf32>
    %87 = arith.select %85, %86, %83 : vector<8x64xi1>, vector<8x64xf32>
    %c7_i32 = arith.constant 7 : i32
    %88 = vector.broadcast %c7_i32 : i32 to vector<8x1xi32>
    %89 = arith.cmpi eq, %80, %88 : vector<8x1xi32>
    %c7_i32_44 = arith.constant 7 : i32
    %90 = tpu.dynamic_rotate %63 by %c7_i32_44 dim 0 : vector<8x64xf32>, i32 -> vector<8x64xf32>
    %cst_45 = arith.constant 0.000000e+00 : f32
    %91 = vector.shape_cast %89 : vector<8x1xi1> to vector<8x1xi1>
    %92 = vector.broadcast %91 : vector<8x1xi1> to vector<8x64xi1>
    %93 = vector.broadcast %cst_45 : f32 to vector<8x64xf32>
    %94 = arith.select %92, %93, %90 : vector<8x64xi1>, vector<8x64xf32>
    %95 = arith.truncf %87 : vector<8x64xf32> to vector<8x64xbf16>
    %c0_46 = arith.constant 0 : index
    %c0_47 = arith.constant 0 : index
    %c0_48 = arith.constant 0 : index
    %96 = vector.load %arg5[%c0_46, %c0_47, %c0_48] : memref<3x64x128xbf16, #tpu.memory_space<vmem>>, vector<1x64x128xbf16>
    %97 = vector.shape_cast %96 : vector<1x64x128xbf16> to vector<64x128xbf16>
    %cst_49 = arith.constant dense<0.000000e+00> : vector<8x128xf32>
    %98 = tpu.matmul %95, %97, %cst_49 {dimension_numbers = #tpu.dot_dimension_numbers<[1], [0], [0], [1], [0, 0, 1, 1], [], []>} : vector<8x64xbf16>, vector<64x128xbf16>, vector<8x128xf32> -> vector<8x128xf32>
    %99 = arith.truncf %63 : vector<8x64xf32> to vector<8x64xbf16>
    %c1_50 = arith.constant 1 : index
    %c0_51 = arith.constant 0 : index
    %c0_52 = arith.constant 0 : index
    %100 = vector.load %arg5[%c1_50, %c0_51, %c0_52] : memref<3x64x128xbf16, #tpu.memory_space<vmem>>, vector<1x64x128xbf16>
    %101 = vector.shape_cast %100 : vector<1x64x128xbf16> to vector<64x128xbf16>
    %cst_53 = arith.constant dense<0.000000e+00> : vector<8x128xf32>
    %102 = tpu.matmul %99, %101, %cst_53 {dimension_numbers = #tpu.dot_dimension_numbers<[1], [0], [0], [1], [0, 0, 1, 1], [], []>} : vector<8x64xbf16>, vector<64x128xbf16>, vector<8x128xf32> -> vector<8x128xf32>
    %103 = arith.addf %98, %102 : vector<8x128xf32>
    %104 = arith.truncf %94 : vector<8x64xf32> to vector<8x64xbf16>
    %c2_54 = arith.constant 2 : index
    %c0_55 = arith.constant 0 : index
    %c0_56 = arith.constant 0 : index
    %105 = vector.load %arg5[%c2_54, %c0_55, %c0_56] : memref<3x64x128xbf16, #tpu.memory_space<vmem>>, vector<1x64x128xbf16>
    %106 = vector.shape_cast %105 : vector<1x64x128xbf16> to vector<64x128xbf16>
    %cst_57 = arith.constant dense<0.000000e+00> : vector<8x128xf32>
    %107 = tpu.matmul %104, %106, %cst_57 {dimension_numbers = #tpu.dot_dimension_numbers<[1], [0], [0], [1], [0, 0, 1, 1], [], []>} : vector<8x64xbf16>, vector<64x128xbf16>, vector<8x128xf32> -> vector<8x128xf32>
    %108 = arith.addf %103, %107 : vector<8x128xf32>
    %c0_58 = arith.constant 0 : index
    %c0_59 = arith.constant 0 : index
    %109 = vector.load %arg6[%c0_58, %c0_59] : memref<1x128xf32, #tpu.memory_space<vmem>>, vector<1x128xf32>
    %110 = vector.broadcast %109 : vector<1x128xf32> to vector<8x128xf32>
    %111 = arith.addf %108, %110 : vector<8x128xf32>
    %cst_60 = arith.constant 0.000000e+00 : f32
    %112 = vector.broadcast %cst_60 : f32 to vector<8x128xf32>
    %113 = arith.maximumf %111, %112 : vector<8x128xf32>
    %c0_61 = arith.constant 0 : index
    %c0_62 = arith.constant 0 : index
    %114 = vector.load %arg12[%c0_61, %c0_62] : memref<8x128xf32, #tpu.memory_space<vmem>>, vector<8x128xf32>
    tpu.vector_store %arg12[%c0_61, %c0_62], %113 {strides = array<i32>} : memref<8x128xf32, #tpu.memory_space<vmem>>, vector<8x128xf32>,
    %c0_63 = arith.constant 0 : index
    %c0_64 = arith.constant 0 : index
    %115 = tpu.strided_load %arg12[%c0_63, %c0_64] {strides = array<i32: 2, 1>} : memref<8x128xf32, #tpu.memory_space<vmem>>, vector<4x128xf32>
    %c1_65 = arith.constant 1 : index
    %c0_66 = arith.constant 0 : index
    %116 = tpu.strided_load %arg12[%c1_65, %c0_66] {strides = array<i32: 2, 1>} : memref<8x128xf32, #tpu.memory_space<vmem>>, vector<4x128xf32>
    %117 = arith.maximumf %115, %116 : vector<4x128xf32>
    %118 = arith.truncf %117 : vector<4x128xf32> to vector<4x128xbf16>
    %c0_67 = arith.constant 0 : index
    %c0_68 = arith.constant 0 : index
    %c0_69 = arith.constant 0 : index
    %119 = vector.load %arg7[%c0_67, %c0_68, %c0_69] : memref<2x128x64xbf16, #tpu.memory_space<vmem>>, vector<1x128x64xbf16>
    %120 = vector.shape_cast %119 : vector<1x128x64xbf16> to vector<128x64xbf16>
    %cst_70 = arith.constant dense<0.000000e+00> : vector<4x64xf32>
    %121 = tpu.matmul %118, %120, %cst_70 {dimension_numbers = #tpu.dot_dimension_numbers<[1], [0], [0], [1], [0, 0, 1, 1], [], []>} : vector<4x128xbf16>, vector<128x64xbf16>, vector<4x64xf32> -> vector<4x64xf32>
    %c1_71 = arith.constant 1 : index
    %c0_72 = arith.constant 0 : index
    %c0_73 = arith.constant 0 : index
    %122 = vector.load %arg7[%c1_71, %c0_72, %c0_73] : memref<2x128x64xbf16, #tpu.memory_space<vmem>>, vector<1x128x64xbf16>
    %123 = vector.shape_cast %122 : vector<1x128x64xbf16> to vector<128x64xbf16>
    %cst_74 = arith.constant dense<0.000000e+00> : vector<4x64xf32>
    %124 = tpu.matmul %118, %123, %cst_74 {dimension_numbers = #tpu.dot_dimension_numbers<[1], [0], [0], [1], [0, 0, 1, 1], [], []>} : vector<4x128xbf16>, vector<128x64xbf16>, vector<4x64xf32> -> vector<4x64xf32>
    %125 = arith.maximumf %121, %124 : vector<4x64xf32>
    %c0_75 = arith.constant 0 : index
    %c0_76 = arith.constant 0 : index
    %126 = vector.load %arg13[%c0_75, %c0_76] : memref<4x64xf32, #tpu.memory_space<vmem>>, vector<4x64xf32>
    tpu.vector_store %arg13[%c0_75, %c0_76], %125 {strides = array<i32>} : memref<4x64xf32, #tpu.memory_space<vmem>>, vector<4x64xf32>,
    %c0_77 = arith.constant 0 : index
    %c0_78 = arith.constant 0 : index
    %127 = tpu.strided_load %arg13[%c0_77, %c0_78] {strides = array<i32: 4, 1>} : memref<4x64xf32, #tpu.memory_space<vmem>>, vector<1x64xf32>
    %c1_79 = arith.constant 1 : index
    %c0_80 = arith.constant 0 : index
    %128 = tpu.strided_load %arg13[%c1_79, %c0_80] {strides = array<i32: 4, 1>} : memref<4x64xf32, #tpu.memory_space<vmem>>, vector<1x64xf32>
    %c2_81 = arith.constant 2 : index
    %c0_82 = arith.constant 0 : index
    %129 = tpu.strided_load %arg13[%c2_81, %c0_82] {strides = array<i32: 4, 1>} : memref<4x64xf32, #tpu.memory_space<vmem>>, vector<1x64xf32>
    %c3 = arith.constant 3 : index
    %c0_83 = arith.constant 0 : index
    %130 = tpu.strided_load %arg13[%c3, %c0_83] {strides = array<i32: 4, 1>} : memref<4x64xf32, #tpu.memory_space<vmem>>, vector<1x64xf32>
    %131 = tpu.concatenate %127, %128, %129, %130 in 1 : vector<1x64xf32>, vector<1x64xf32>, vector<1x64xf32>, vector<1x64xf32> -> vector<1x256xf32>
    %132 = arith.truncf %131 : vector<1x256xf32> to vector<1x256xbf16>
    %c0_84 = arith.constant 0 : index
    %c0_85 = arith.constant 0 : index
    %133 = vector.load %arg8[%c0_84, %c0_85] : memref<256x128xbf16, #tpu.memory_space<vmem>>, vector<256x128xbf16>
    %cst_86 = arith.constant dense<0.000000e+00> : vector<1x128xf32>
    %134 = tpu.matmul %132, %133, %cst_86 {dimension_numbers = #tpu.dot_dimension_numbers<[1], [0], [0], [1], [0, 0, 1, 1], [], []>} : vector<1x256xbf16>, vector<256x128xbf16>, vector<1x128xf32> -> vector<1x128xf32>
    %c0_87 = arith.constant 0 : index
    %c0_88 = arith.constant 0 : index
    %135 = vector.load %arg9[%c0_87, %c0_88] : memref<1x128xf32, #tpu.memory_space<vmem>>, vector<1x128xf32>
    %136 = arith.addf %134, %135 : vector<1x128xf32>
    %c0_89 = arith.constant 0 : index
    %c0_90 = arith.constant 0 : index
    %c0_91 = arith.constant 0 : index
    %137 = vector.load %arg10[%c0_89, %c0_90, %c0_91] : memref<1x1x128xf32, #tpu.memory_space<vmem>>, vector<1x1x128xf32>
    %138 = vector.shape_cast %137 : vector<1x1x128xf32> to vector<1x128xf32>
    %139 = vector.shape_cast %136 : vector<1x128xf32> to vector<1x1x128xf32>
    tpu.vector_store %arg10[%c0_89, %c0_90, %c0_91], %139 {strides = array<i32>} : memref<1x1x128xf32, #tpu.memory_space<vmem>>, vector<1x1x128xf32>,
    return
  }
  func.func @transform_0(%arg0: i32) -> (i32, i32, i32) {
    %c0_i32 = arith.constant 0 : i32
    %c0_i32_0 = arith.constant 0 : i32
    %c0_i32_1 = arith.constant 0 : i32
    return %arg0, %c0_i32, %c0_i32_0 : i32, i32, i32
  }
  func.func @transform_1(%arg0: i32) -> (i32, i32, i32) {
    %c0_i32 = arith.constant 0 : i32
    %c0_i32_0 = arith.constant 0 : i32
    %c0_i32_1 = arith.constant 0 : i32
    %c0_i32_2 = arith.constant 0 : i32
    return %c0_i32, %c0_i32_0, %c0_i32_1 : i32, i32, i32
  }
  func.func @transform_2(%arg0: i32) -> (i32, i32) {
    %c0_i32 = arith.constant 0 : i32
    %c0_i32_0 = arith.constant 0 : i32
    %c0_i32_1 = arith.constant 0 : i32
    return %c0_i32, %c0_i32_0 : i32, i32
  }
  func.func @transform_3(%arg0: i32) -> (i32, i32, i32) {
    %c0_i32 = arith.constant 0 : i32
    %c0_i32_0 = arith.constant 0 : i32
    %c0_i32_1 = arith.constant 0 : i32
    %c0_i32_2 = arith.constant 0 : i32
    return %c0_i32, %c0_i32_0, %c0_i32_1 : i32, i32, i32
  }
  func.func @transform_4(%arg0: i32) -> (i32, i32, i32) {
    %c0_i32 = arith.constant 0 : i32
    %c0_i32_0 = arith.constant 0 : i32
    %c0_i32_1 = arith.constant 0 : i32
    %c0_i32_2 = arith.constant 0 : i32
    return %c0_i32, %c0_i32_0, %c0_i32_1 : i32, i32, i32
  }
  func.func @transform_5(%arg0: i32) -> (i32, i32) {
    %c0_i32 = arith.constant 0 : i32
    %c0_i32_0 = arith.constant 0 : i32
    %c0_i32_1 = arith.constant 0 : i32
    return %c0_i32, %c0_i32_0 : i32, i32
  }
  func.func @transform_6(%arg0: i32) -> (i32, i32, i32) {
    %c0_i32 = arith.constant 0 : i32
    %c0_i32_0 = arith.constant 0 : i32
    %c0_i32_1 = arith.constant 0 : i32
    %c0_i32_2 = arith.constant 0 : i32
    return %c0_i32, %c0_i32_0, %c0_i32_1 : i32, i32, i32
  }
  func.func @transform_7(%arg0: i32) -> (i32, i32) {
    %c0_i32 = arith.constant 0 : i32
    %c0_i32_0 = arith.constant 0 : i32
    %c0_i32_1 = arith.constant 0 : i32
    return %c0_i32, %c0_i32_0 : i32, i32
  }
  func.func @transform_8(%arg0: i32) -> (i32, i32) {
    %c0_i32 = arith.constant 0 : i32
    %c0_i32_0 = arith.constant 0 : i32
    %c0_i32_1 = arith.constant 0 : i32
    return %c0_i32, %c0_i32_0 : i32, i32
  }
  func.func @transform_9(%arg0: i32) -> (i32, i32, i32) {
    %c0_i32 = arith.constant 0 : i32
    %c0_i32_0 = arith.constant 0 : i32
    %c0_i32_1 = arith.constant 0 : i32
    return %arg0, %c0_i32, %c0_i32_0 : i32, i32, i32
  }
}

</mosaic_0001>

<bundles_post_ra>
// kernel: stl10_forward.1
= control target key start
LH: loop header
LB: loop body
LE: loop exit
PB: predicated region body
PF: predicated region fallthrough
CT: control target
= control target key end

     0   :  { %14 = vsyncpa [#allocation6], 0  ;;  %s2654_s0 = inlined_call_operand.vmem [shape: f32[2,16,64], index: 0, kind: input, shape index: {}]   ;;  %s2655_s1 = inlined_call_operand.vmem [shape: bf16[3,64,128], index: 1, kind: input, shape index: {}]   ;;  %s2656_s2 = inlined_call_operand.vmem [shape: f32[1,128], index: 2, kind: input, shape index: {}]   ;;  %s2657_s3 = inlined_call_operand.vmem [shape: bf16[2,128,64], index: 3, kind: input, shape index: {}]   ;;  %s2658_s4 = inlined_call_operand.vmem [shape: bf16[3,64,128], index: 4, kind: input, shape index: {}]   ;;  %s2659_s5 = inlined_call_operand.vmem [shape: f32[1,128], index: 5, kind: input, shape index: {}]   ;;  %s2660_s6 = inlined_call_operand.vmem [shape: bf16[2,128,64], index: 6, kind: input, shape index: {}]   ;;  %s2661_s7 = inlined_call_operand.vmem [shape: bf16[256,128], index: 7, kind: input, shape index: {}]   ;;  %s2662_s8 = inlined_call_operand.vmem [shape: f32[1,128], index: 8, kind: input, shape index: {}]   ;;  %s2663_s9 = inlined_call_operand.hbm [shape: f32[2,1,128], index: 9, kind: output, shape index: {}]  }
   0x1   :  { %16 = vsyncpa [#allocation6 + $0x1], 0  ;;  %s2218_s30 = smov 0   ;;  %s2220_s10 = smov 0  }
   0x2   :  { %s2222_s11 = smov 0   ;;  %s2224_s12 = smov 0  }
   0x3 LB: > { %s2239_s13 = sadd.s32 4294967295, %s2162_s12   ;;  %s1587_s14 = sadd.s32 4294967294, %s2162_s12   ;;  %s2162_s12 = sphi %s2224_s12, %s2673_s12   ;;  %s2158_s11 = sphi %s2222_s11, %s2672_s11   ;;  %s2154_s10 = sphi %s2220_s10, %s2671_s10   ;;  %s2150_s30 = sphi %s2218_s30, %s2670_s30  }
   0x4   : > { %s2243_s15 = sadd.s32 1, %s2162_s12   ;;  %s223_s16 = sadd.s32 1, %s2158_s11 }
   0x5   : > { %s220_s17 = ssub.s32 %s2162_s12, %s2243_s15  ;;  %p233_p0 = scmp.ne.s32.totalorder %s2158_s11, %s2154_s10 }
   0x6   : > { %p221_p1 = scmp.eq.s32.totalorder %s220_s17, 0  ;;  %p234_p2 = scmp.eq.s32.totalorder %s2239_s13, 1 }
   0x7   : > { %p239_p3 = scmp.ne.s32.totalorder %s2154_s10, %s2150_s30  ;;  %p240_p4 = scmp.eq.s32.totalorder %s1587_s14, 1 }
   0x8   : > { %s2254_s18 = scalar_select %p221_p1, %s2158_s11, %s223_s16  }
   0x9   : > { %p2256_p5 = por %p234_p2, %p233_p0  ;;  %p2260_p6 = por %p240_p4, %p239_p3 }
   0xa   : > { %p1590_p7 = scmp.ge.s32.totalorder %s2162_s12, 1  ;;  %p290_p8 = scmp.lt.s32.totalorder %s2162_s12, 3 }
   0xc   : > { %p291_p9 = pnand %p1590_p7, %p290_p8 }
   0xd   : > { %v2028_v0 = vld [vmem:[%s2655_s1 + $0x20] sm:$0xff] (!%p291_p9)   ;;  %v2164_v1 = vmov (!%p291_p9), 0.0   ;;  %v333_v2 = vlaneseq (!%p291_p9)  ;;  %v2029_v3 = vld [vmem:[%s2655_s1 + $0x28] sm:$0xff] (!%p291_p9)   ;;  %vm2165_vm0 = vmmov (!%p291_p9), 0   ;;  %p325_p10 = scmp.lt.s32.totalorder (!%p291_p9), %s2239_s13, 1  ;;  %v2030_v5 = vld [vmem:[%s2655_s1 + $0x30] sm:$0xff] (!%p291_p9)  }
   0xe   : > { %294 = sbr.rel (%p291_p9) target bundleno = 1318 (0x526), region = 56  ;;  %1829 = vmatprep.subr.bf16.mxu1 (!%p291_p9), %v2164_v1  ;;  %1853 = vmatprep.subr.bf16.mxu0 (!%p291_p9), %v2164_v1  ;;  %v2032_v4 = vld [vmem:[%s2655_s1 + $0x40] sm:$0xff] (!%p291_p9)   ;;  %v2034_v7 = vld [vmem:[%s2655_s1 + $0x48] sm:$0xff] (!%p291_p9)   ;;  %v2031_v9 = vld [vmem:[%s2655_s1 + $0x38] sm:$0xff] (!%p291_p9)   ;;  %vm429_vm2 = vcmask (!%p291_p9), 523264   ;;  %vm1328_vm8 = vcmask (!%p291_p9), 519168  }
   0xf   : > { %1830 = vmatpush3.bf16.msra.mxu1 (!%p291_p9), %v2028_v0  ;;  %1837 = vmatprep.mubr.msk.bf16.mxu1 (!%p291_p9), %vm2165_vm0, %v2164_v1  ;;  %v2287_v6 = vshrl.u32 (!%p291_p9), %v333_v2, 7  ;;  %v2036_v17 = vld [vmem:[%s2655_s1 + $0x50] sm:$0xff] (!%p291_p9)   ;;  %v2033_v23 = vld [vmem:[%s2655_s1] sm:$0xff] (!%p291_p9)   ;;  %v2038_v24 = vld [vmem:[%s2655_s1 + $0x58] sm:$0xff] (!%p291_p9)   ;;  %s323_s16 = sand.u32 (!%p291_p9), 1, %s2154_s10   ;;  %s1737_s22 = sshll.u32 (!%p291_p9), %s2239_s13, 4 }
  0x10   : > { %1831 = vmatprep.subr.bf16.mxu1 (!%p291_p9), %v2164_v1  ;;  %1861 = vmatprep.mubr.msk.bf16.mxu0 (!%p291_p9), %vm2165_vm0, %v2164_v1  ;;  %v2035_v29 = vld [vmem:[%s2655_s1 + $0x8] sm:$0xff] (!%p291_p9)   ;;  %v2037_v31 = vld [vmem:[%s2655_s1 + $0x10] sm:$0xff] (!%p291_p9)   ;;  %v2039_v32 = vld [vmem:[%s2655_s1 + $0x18] sm:$0xff] (!%p291_p9)   ;;  %s2612_s27 = scalar_lea.hbm (!%p291_p9), %s2663_s9, %s1737_s22  ;;  %s1520_s28 = scalar_lea.sflag (!%p291_p9), [#allocation6], %s323_s16 }
  0x11   : > { %1854 = vmatpush3.bf16.msra.mxu0 (!%p291_p9), %v2032_v4  ;;  %v335_v8 = vadd.s32 (!%p291_p9), 8, %v2287_v6  ;;  %vm377_vm1 = vcmp.lt.s32.totalorder (!%p291_p9), %v2287_v6, 7  ;;  %v340_v12 = vand.u32 (!%p291_p9), 15, %v2287_v6  ;;  %vm364_vm5 = vcmp.lt.s32.totalorder (!%p291_p9), %v2287_v6, 1  ;;  %v2040_v35 = vld [vmem:[%s2657_s3] sm:$0xff] (!%p291_p9)   ;;  %v2042_v37 = vld [vmem:[%s2657_s3 + $0x8] sm:$0xff] (!%p291_p9)  }
  0x12   : > { %1855 = vmatprep.subr.bf16.mxu0 (!%p291_p9), %v2164_v1  ;;  %v2041_v36 = vld [vmem:[%s2657_s3 + $0x40] sm:$0xff] (!%p291_p9)   ;;  %v2043_v38 = vld [vmem:[%s2657_s3 + $0x48] sm:$0xff] (!%p291_p9)   ;;  %v2044_v39 = vld [vmem:[%s2657_s3 + $0x10] sm:$0xff] (!%p291_p9)  }
  0x13   : > { %1832 = vmatpush3.bf16.msra.mxu1 (!%p291_p9), %v2029_v3  ;;  %v347_v18 = vand.u32 (!%p291_p9), 15, %v335_v8  ;;  %vm2314_vm4 = vcmp.eq.s32.totalorder (!%p291_p9), %v340_v12, 0  ;;  %v2045_v40 = vld [vmem:[%s2657_s3 + $0x50] sm:$0xff] (!%p291_p9)   ;;  %v2046_v41 = vld [vmem:[%s2657_s3 + $0x18] sm:$0xff] (!%p291_p9)   ;;  %v2048_v43 = vld [vmem:[%s2657_s3 + $0x20] sm:$0xff] (!%p291_p9)  }
  0x14   : > { %1833 = vmatprep.subr.bf16.mxu1 (!%p291_p9), %v2164_v1  ;;  %v2047_v42 = vld [vmem:[%s2657_s3 + $0x58] sm:$0xff] (!%p291_p9)   ;;  %v2049_v44 = vld [vmem:[%s2657_s3 + $0x60] sm:$0xff] (!%p291_p9)   ;;  %v2050_v45 = vld [vmem:[%s2657_s3 + $0x28] sm:$0xff] (!%p291_p9)  }
  0x15   : > { %s326_s25 = scalar_select %p325_p10, %s2239_s13, 1  ;;  %1856 = vmatpush3.bf16.msra.mxu0 %v2034_v7  ;;  %vm2310_vm3 = vcmp.eq.s32.totalorder %v347_v18, 15  ;;  %v2051_v46 = vld [vmem:[%s2657_s3 + $0x68] sm:$0xff]   ;;  %v2052_v47 = vld [vmem:[%s2657_s3 + $0x30] sm:$0xff]   ;;  %v2054_v49 = vld [vmem:[%s2657_s3 + $0x38] sm:$0xff]  }
  0x16   : > { %1857 = vmatprep.subr.bf16.mxu0 %v2164_v1  ;;  %v2053_v48 = vld [vmem:[%s2657_s3 + $0x70] sm:$0xff]   ;;  %v2055_v50 = vld [vmem:[%s2657_s3 + $0x78] sm:$0xff]   ;;  %v1624_v62 = vld [vmem:[%s2656_s2] ss:$0 sm:$0xff]  ;;  %s2167_s13 = smov [#allocation5]  }
  0x17   : > { %s1740_s14 = sshll.u32 %s326_s25, 4  ;;  %1834 = vmatpush3.bf16.msra.mxu1 %v2030_v5  ;;  %v2059_v18 = vld [vmem:[%s2658_s4 + $0x30] sm:$0xff]   ;;  %v2063_v21 = vld [vmem:[%s2658_s4 + $0x18] sm:$0xff]  }
  0x18   : > { %s329_s23 = scalar_lea.vmem %s2654_s0, %s1740_s14  ;;  %1835 = vmatprep.subr.bf16.mxu1 %v2164_v1  ;;  %v2062_v20 = vld [vmem:[%s2658_s4 + $0x10] sm:$0xff]   ;;  %s2166_s14 = smov 64  }
  0x19   : > { %v331_v10 = vld [vmem:[%s329_s23] sm:$0xff]  ;;  %v332_v11 = vld [vmem:[%s329_s23 + $0x8] sm:$0xff]  ;;  %1858 = vmatpush3.bf16.msra.mxu0 %v2036_v17  ;;  %s324_s23 = scalar_lea.vmem [#allocation5], %s323_s16 }
  0x1a   : > { %v362_v13 = vrot.slane %v331_v10, 7  ;;  %v363_v14 = vrot.slane %v332_v11, 7  ;;  %v375_v15 = vrot.slane %v331_v10, 1  ;;  %v376_v16 = vrot.slane %v332_v11, 1  ;;  %1859 = vmatprep.subr.bf16.mxu0 %v2164_v1  ;;  %v2060_v17 = vld [vmem:[%s2658_s4 + $0x8] sm:$0xff]   ;;  %s1532_s24 = sshll.u32 %s324_s23, 4  ;;  %s2614_s24 = int_to_ptr.vmem [resolvable:$true] %s1532_s24 }
  0x1b   : > { %v395_v22 = vpack.c.bf16 %v332_v11, %v331_v10  ;;  %1836 = vmatpush3.bf16.msra.mxu1 %v2031_v9  ;;  %s2100_s29 = scalar_lea.vmem %s2614_s24, 16 }
  0x1c   : > { %v379_v19 = vsel %vm377_vm1, %v376_v16, %v375_v15  ;;  %v378_v26 = vsel %vm377_vm1, %v375_v15, %v376_v16  ;;  %v366_v27 = vsel %vm364_vm5, %v363_v14, %v362_v13  ;;  %1841 = vmatprep.subr.bf16.mxu1 %v2164_v1  ;;  %v365_v33 = vsel %vm364_vm5, %v362_v13, %v363_v14  ;;  %v2056_v13 = vld [vmem:[%s2658_s4 + $0x20] sm:$0xff]   ;;  %v2057_v16 = vld [vmem:[%s2658_s4 + $0x28] sm:$0xff]   ;;  %p2101_p11 = scmp.ne.s32.totalorder %s2614_s24, %s2100_s29 }
  0x1d   : > { %v385_v25 = vsel %vm2310_vm3, 0.0, %v379_v19  ;;  %v371_v28 = vsel %vm2314_vm4, 0.0, %v366_v27  ;;  %1860 = vmatpush3.bf16.msra.mxu0 %v2038_v24  ;;  %v2058_v14 = vld [vmem:[%s2658_s4] sm:$0xff]   ;;  %v2061_v19 = vld [vmem:[%s2658_s4 + $0x38] sm:$0xff]  }
  0x1e   : > { %1838 = vmatmul.mubr.msk.bf16.vlgmr.msra.gmra.mrb[0].mxu1 %vm429_vm2, %v395_v22  ;;  %v542_v30 = vpack.c.bf16 %v385_v25, %v378_v26  ;;  %1885 = vmatprep.subr.bf16.mxu0 %v2164_v1  ;;  %v386_v34 = vpack.c.bf16 %v365_v33, %v371_v28  ;;  %v854_v22 = vand.u32 7, %v2287_v6  ;;  %p2102_p12 = pnand %p2101_p11, %p2256_p5 }
  0x1f   : > { %1842 = vmatpush3.bf16.msra.mxu1 %v2033_v23  ;;  %1849 = vmatprep.mubr.msk.bf16.mxu1 %vm2165_vm0, %v2164_v1 }
  0x20   : > { %1843 = vmatprep.subr.bf16.mxu1 %v2164_v1  ;;  %1862 = vmatmul.mubr.msk.bf16.vlgmr.msra.gmra.mrb[0].mxu0 %vm429_vm2, %v542_v30  ;;  %vm862_vm6 = vcmp.eq.s32.totalorder %v854_v22, 0  ;;  %v2064_v30 = vld [vmem:[%s2658_s4 + $0x40] sm:$0xff]   ;;  %vm867_vm7 = vcmp.eq.s32.totalorder %v854_v22, 7  ;;  %v2090_v22 = vld [vmem:[%s2661_s7 + $0x58] sm:$0xff]   ;;  %p2103_p13 = pneg %p2102_p12 }
  0x21   : > { %1901 = vmatprep.mubr.msk.bf16.mxu0 %vm2165_vm0, %v2164_v1  ;;  %1886 = vmatpush3.bf16.msra.mxu0 %v2041_v36  ;;  %v2065_v36 = vld [vmem:[%s2658_s4 + $0x48] sm:$0xff]  }
  0x22   : > { %1887 = vmatprep.subr.bf16.mxu0 %v2164_v1 }
  0x23   : > { %1844 = vmatpush3.bf16.msra.mxu1 %v2035_v29 }
  0x24   : > { %1845 = vmatprep.subr.bf16.mxu1 %v2164_v1 }
  0x25   : > { %1888 = vmatpush3.bf16.msra.mxu0 %v2043_v38 }
  0x26   : > { %1889 = vmatprep.subr.bf16.mxu0 %v2164_v1 }
  0x27   : > { %1846 = vmatpush3.bf16.msra.mxu1 %v2037_v31 }
  0x28   : > { %1847 = vmatprep.subr.bf16.mxu1 %v2164_v1 }
  0x29   : > { %1890 = vmatpush3.bf16.msra.mxu0 %v2045_v40 }
  0x2a   : > { %1891 = vmatprep.subr.bf16.mxu0 %v2164_v1 }
  0x2b   : > { %1848 = vmatpush3.bf16.msra.mxu1 %v2039_v32 }
  0x2c   : > { %1865 = vmatprep.subr.bf16.mxu1 %v2164_v1 }
  0x2d   : > { %1892 = vmatpush3.bf16.msra.mxu0 %v2047_v42  ;;  %v2068_v42 = vld [vmem:[%s2660_s6] sm:$0xff]  }
  0x2e   : > { %1850 = vmatmul.mubr.msk.bf16.vlgmr.msra.gmra.mrb[4].mxu1 %vm429_vm2, %v386_v34  ;;  %1893 = vmatprep.subr.bf16.mxu0 %v2164_v1 }
  0x2f   : > { %1881 = vmatprep.mubr.msk.bf16.mxu1 %vm2165_vm0, %v2164_v1  ;;  %1866 = vmatpush3.bf16.msra.mxu1 %v2040_v35 }
  0x30   : > { %1867 = vmatprep.subr.bf16.mxu1 %v2164_v1 }
  0x31   : > { %1894 = vmatpush3.bf16.msra.mxu0 %v2049_v44  ;;  %v2070_v44 = vld [vmem:[%s2660_s6 + $0x8] sm:$0xff]  }
  0x32   : > { %1895 = vmatprep.subr.bf16.mxu0 %v2164_v1 }
  0x33   : > { %1868 = vmatpush3.bf16.msra.mxu1 %v2042_v37  ;;  %v2066_v37 = vld [vmem:[%s2658_s4 + $0x50] sm:$0xff]  }
  0x34   : > { %1869 = vmatprep.subr.bf16.mxu1 %v2164_v1 }
  0x35   : > { %1896 = vmatpush3.bf16.msra.mxu0 %v2051_v46  ;;  %v2072_v46 = vld [vmem:[%s2660_s6 + $0x10] sm:$0xff]  }
  0x36   : > { %1897 = vmatprep.subr.bf16.mxu0 %v2164_v1 }
  0x37   : > { %1870 = vmatpush3.bf16.msra.mxu1 %v2044_v39  ;;  %v2067_v39 = vld [vmem:[%s2658_s4 + $0x58] sm:$0xff]  }
  0x38   : > { %1871 = vmatprep.subr.bf16.mxu1 %v2164_v1 }
  0x39   : > { %1898 = vmatpush3.bf16.msra.mxu0 %v2053_v48  ;;  %v2074_v48 = vld [vmem:[%s2660_s6 + $0x18] sm:$0xff]  }
  0x3a   : > { %1899 = vmatprep.subr.bf16.mxu0 %v2164_v1 }
  0x3b   : > { %1872 = vmatpush3.bf16.msra.mxu1 %v2046_v41 }
  0x3c   : > { %1873 = vmatprep.subr.bf16.mxu1 %v2164_v1 }
  0x3d   : > { %1900 = vmatpush3.bf16.msra.mxu0 %v2055_v50  ;;  %v2076_v50 = vld [vmem:[%s2660_s6 + $0x20] sm:$0xff]  }
  0x3e   : > { %1917 = vmatprep.subr.bf16.mxu0 %v2164_v1 }
  0x3f   : > { %1874 = vmatpush3.bf16.msra.mxu1 %v2048_v43  ;;  %v2069_v43 = vld [vmem:[%s2660_s6 + $0x40] sm:$0xff]  }
  0x40   : > { %1875 = vmatprep.subr.bf16.mxu1 %v2164_v1 }
  0x43   : > { %1876 = vmatpush3.bf16.msra.mxu1 %v2050_v45  ;;  %v2071_v45 = vld [vmem:[%s2660_s6 + $0x48] sm:$0xff]  }
  0x44   : > { %1877 = vmatprep.subr.bf16.mxu1 %v2164_v1 }
  0x47   : > { %1878 = vmatpush3.bf16.msra.mxu1 %v2052_v47  ;;  %v2073_v47 = vld [vmem:[%s2660_s6 + $0x50] sm:$0xff]  }
  0x48   : > { %1879 = vmatprep.subr.bf16.mxu1 %v2164_v1 }
  0x4b   : > { %1880 = vmatpush3.bf16.msra.mxu1 %v2054_v49  ;;  %v2075_v49 = vld [vmem:[%s2660_s6 + $0x58] sm:$0xff]  }
  0x4c   : > { %1905 = vmatprep.subr.bf16.mxu1 %v2164_v1 }
  0xf1   : > { %v467_v51 = vpop.f32.mrb[0].mxu1 }
  0xf2   : > { %v1839_v52 = vpop.f32.mrb[1].mxu1 }
  0xf3   : > { %v470_v53 = vpop.f32.mrb[2].mxu1  ;;  %v613_v55 = vpop.f32.mrb[0].mxu0  ;;  %v2078_v52 = vld [vmem:[%s2660_s6 + $0x28] sm:$0xff]  }
  0xf4   : > { %v1840_v54 = vpop.f32.mrb[3].mxu1  ;;  %v1863_v56 = vpop.f32.mrb[1].mxu0 }
  0xf5   : > { %v616_v57 = vpop.f32.mrb[2].mxu0  ;;  %v2080_v54 = vld [vmem:[%s2660_s6 + $0x30] sm:$0xff]   ;;  %v2082_v56 = vld [vmem:[%s2660_s6 + $0x38] sm:$0xff]  }
  0xf6   : > { %v1864_v58 = vpop.f32.mrb[3].mxu0 }
 0x101   : > { %v535_v59 = vpop.f32.mrb[4].mxu1 }
 0x102   : > { %v536_v60 = vadd.f32 %v535_v59, %v467_v51  ;;  %v1851_v61 = vpop.f32.mrb[5].mxu1  ;;  %v2077_v51 = vld [vmem:[%s2660_s6 + $0x60] sm:$0xff]  }
 0x103   : > { %v538_v63 = vpop.f32.mrb[6].mxu1 }
 0x104   : > { %v620_v0 = vadd.f32 %v613_v55, %v536_v60  ;;  %v539_v2 = vadd.f32 %v538_v63, %v470_v53  ;;  %v1852_v3 = vpop.f32.mrb[7].mxu1  ;;  %v2079_v53 = vld [vmem:[%s2660_s6 + $0x68] sm:$0xff]   ;;  %v2081_v55 = vld [vmem:[%s2660_s6 + $0x70] sm:$0xff]  }
 0x106   : > { %v629_v4 = vadd.f32 %v1624_v62, %v620_v0  ;;  %v621_v5 = vadd.f32 %v616_v57, %v539_v2  ;;  %v2083_v57 = vld [vmem:[%s2660_s6 + $0x78] sm:$0xff]  }
 0x108   : > { %v631_v7 = vmax.f32 %v629_v4, 0.0  ;;  %v630_v8 = vadd.f32 %v1624_v62, %v621_v5  ;;  %v1688_v5 = vld [vmem:[%s2659_s5] ss:$0 sm:$0xff] }
 0x10a   : > { %633 = vst [vmem:[#allocation2] sm:$0xff] %v631_v7  ;;  %v632_v9 = vmax.f32 %v630_v8, 0.0 }
 0x10c   : > { %634 = vst [vmem:[#allocation2 + $0x8] sm:$0xff] %v632_v9 }
 0x113   : > { %v635_v10 = vld [vmem:[#allocation2] ss:$2 sm:$0xff]  ;;  %v637_v11 = vld [vmem:[#allocation2 + $0x1] ss:$2 sm:$0xff] }
 0x114   : > { %v638_v12 = vmax.f32 %v635_v10, %v637_v11 }
 0x116   : > { %v639_v15 = vpack.c.bf16 %v638_v12, %v638_v12 }
 0x118   : > { %1882 = vmatmul.mubr.bf16.vlgmr.msra.gmra.mrb[8].mxu1 %v639_v15  ;;  %1902 = vmatmul.mubr.bf16.vlgmr.msra.gmra.mrb[4].mxu0 %v639_v15 }
 0x119   : > { %1906 = vmatpush3.bf16.msra.mxu1 %v2056_v13  ;;  %1918 = vmatpush3.bf16.msra.mxu0 %v2058_v14 }
 0x11a   : > { %1907 = vmatprep.subr.bf16.mxu1 %v2164_v1  ;;  %1919 = vmatprep.subr.bf16.mxu0 %v2164_v1 }
 0x11b   : > { %1913 = vmatprep.mubr.msk.bf16.mxu1 %vm2165_vm0, %v2164_v1  ;;  %1925 = vmatprep.mubr.msk.bf16.mxu0 %vm2165_vm0, %v2164_v1 }
 0x11d   : > { %1908 = vmatpush3.bf16.msra.mxu1 %v2057_v16  ;;  %1920 = vmatpush3.bf16.msra.mxu0 %v2060_v17  ;;  %v2084_v16 = vld [vmem:[%s2661_s7 + $0x40] sm:$0xff]  }
 0x11e   : > { %1909 = vmatprep.subr.bf16.mxu1 %v2164_v1  ;;  %1921 = vmatprep.subr.bf16.mxu0 %v2164_v1  ;;  %v2085_v17 = vld [vmem:[%s2661_s7] sm:$0xff]  }
 0x121   : > { %1910 = vmatpush3.bf16.msra.mxu1 %v2059_v18  ;;  %1922 = vmatpush3.bf16.msra.mxu0 %v2062_v20  ;;  %v2086_v18 = vld [vmem:[%s2661_s7 + $0x48] sm:$0xff]   ;;  %v2088_v20 = vld [vmem:[%s2661_s7 + $0x50] sm:$0xff]  }
 0x122   : > { %1911 = vmatprep.subr.bf16.mxu1 %v2164_v1  ;;  %1923 = vmatprep.subr.bf16.mxu0 %v2164_v1 }
 0x125   : > { %1912 = vmatpush3.bf16.msra.mxu1 %v2061_v19  ;;  %1924 = vmatpush3.bf16.msra.mxu0 %v2063_v21  ;;  %v2087_v19 = vld [vmem:[%s2661_s7 + $0x8] sm:$0xff]   ;;  %v2089_v21 = vld [vmem:[%s2661_s7 + $0x10] sm:$0xff]  }
 0x126   : > { %1929 = vmatprep.subr.bf16.mxu1 %v2164_v1  ;;  %1941 = vmatprep.subr.bf16.mxu0 %v2164_v1 }
 0x1eb   : > { %v738_v23 = vpop.f32.mrb[8].mxu1  ;;  %v843_v24 = vpop.f32.mrb[4].mxu0 }
 0x1ec   : > { %v849_v25 = vmax.f32 %v738_v23, %v843_v24  ;;  %v1883_v26 = vpop.f32.mrb[9].mxu1  ;;  %v1903_v27 = vpop.f32.mrb[5].mxu0  ;;  %v2091_v23 = vld [vmem:[%s2661_s7 + $0x18] sm:$0xff]   ;;  %v2092_v24 = vld [vmem:[%s2661_s7 + $0x60] sm:$0xff]  }
 0x1ed   : > { %v741_v28 = vpop.f32.mrb[10].mxu1  ;;  %v846_v29 = vpop.f32.mrb[6].mxu0  ;;  %v2094_v26 = vld [vmem:[%s2661_s7 + $0x68] sm:$0xff]  }
 0x1ee   : > { %v863_v31 = vrot.slane %v849_v25, 7  ;;  %v881_v32 = vpack.c.bf16 %v849_v25, %v849_v25  ;;  %v1884_v33 = vpop.f32.mrb[11].mxu1  ;;  %v1904_v34 = vpop.f32.mrb[7].mxu0  ;;  %v868_v38 = vrot.slane %v849_v25, 1  ;;  %v2093_v25 = vld [vmem:[%s2661_s7 + $0x20] sm:$0xff]   ;;  %v2095_v27 = vld [vmem:[%s2661_s7 + $0x28] sm:$0xff]  }
 0x1ef   : > { %v2096_v28 = vld [vmem:[%s2661_s7 + $0x70] sm:$0xff]  }
 0x1f0   : > { %v866_v35 = vsel %vm862_vm6, 0.0, %v863_v31  ;;  %1914 = vmatmul.mubr.msk.bf16.vlgmr.msra.gmra.mrb[12].mxu1 %vm429_vm2, %v881_v32  ;;  %v871_v40 = vsel %vm867_vm7, 0.0, %v868_v38  ;;  %v2097_v29 = vld [vmem:[%s2661_s7 + $0x30] sm:$0xff]  }
 0x1f1   : > { %v872_v6 = vpack.c.bf16 %v866_v35, %v866_v35  ;;  %1930 = vmatpush3.bf16.msra.mxu1 %v2064_v30  ;;  %1937 = vmatprep.mubr.msk.bf16.mxu1 %vm2165_vm0, %v2164_v1  ;;  %v1025_v41 = vpack.c.bf16 %v871_v40, %v871_v40  ;;  %v2098_v35 = vld [vmem:[%s2661_s7 + $0x78] sm:$0xff]  }
 0x1f2   : > { %1931 = vmatprep.subr.bf16.mxu1 %v2164_v1 }
 0x1f3   : > { %1926 = vmatmul.mubr.msk.bf16.vlgmr.msra.gmra.mrb[8].mxu0 %vm429_vm2, %v872_v6 }
 0x1f4   : > { %1957 = vmatprep.mubr.msk.bf16.mxu0 %vm2165_vm0, %v2164_v1  ;;  %1942 = vmatpush3.bf16.msra.mxu0 %v2068_v42 }
 0x1f5   : > { %1932 = vmatpush3.bf16.msra.mxu1 %v2065_v36  ;;  %1943 = vmatprep.subr.bf16.mxu0 %v2164_v1 }
 0x1f6   : > { %1933 = vmatprep.subr.bf16.mxu1 %v2164_v1 }
 0x1f8   : > { %1944 = vmatpush3.bf16.msra.mxu0 %v2070_v44 }
 0x1f9   : > { %1934 = vmatpush3.bf16.msra.mxu1 %v2066_v37  ;;  %1945 = vmatprep.subr.bf16.mxu0 %v2164_v1  ;;  %v2099_v37 = vld [vmem:[%s2661_s7 + $0x38] sm:$0xff]  }
 0x1fa   : > { %1935 = vmatprep.subr.bf16.mxu1 %v2164_v1 }
 0x1fc   : > { %1946 = vmatpush3.bf16.msra.mxu0 %v2072_v46 }
 0x1fd   : > { %1936 = vmatpush3.bf16.msra.mxu1 %v2067_v39  ;;  %1947 = vmatprep.subr.bf16.mxu0 %v2164_v1 }
 0x1fe   : > { %1961 = vmatprep.subr.bf16.mxu1 %v2164_v1 }
 0x200   : > { %1938 = vmatmul.mubr.msk.bf16.vlgmr.msra.gmra.mrb[16].mxu1 %vm429_vm2, %v1025_v41  ;;  %1948 = vmatpush3.bf16.msra.mxu0 %v2074_v48 }
 0x201   : > { %1977 = vmatprep.mubr.msk.bf16.mxu1 %vm2165_vm0, %v2164_v1  ;;  %1962 = vmatpush3.bf16.msra.mxu1 %v2069_v43 }
 0x202   : > { %1963 = vmatprep.subr.bf16.mxu1 %v2164_v1  ;;  %1949 = vmatprep.subr.bf16.mxu0 %v2164_v1 }
 0x204   : > { %1950 = vmatpush3.bf16.msra.mxu0 %v2076_v50 }
 0x205   : > { %1964 = vmatpush3.bf16.msra.mxu1 %v2071_v45  ;;  %1951 = vmatprep.subr.bf16.mxu0 %v2164_v1 }
 0x206   : > { %1965 = vmatprep.subr.bf16.mxu1 %v2164_v1 }
 0x208   : > { %1952 = vmatpush3.bf16.msra.mxu0 %v2078_v52 }
 0x209   : > { %1966 = vmatpush3.bf16.msra.mxu1 %v2073_v47  ;;  %1953 = vmatprep.subr.bf16.mxu0 %v2164_v1 }
 0x20a   : > { %1967 = vmatprep.subr.bf16.mxu1 %v2164_v1 }
 0x20c   : > { %1954 = vmatpush3.bf16.msra.mxu0 %v2080_v54 }
 0x20d   : > { %1968 = vmatpush3.bf16.msra.mxu1 %v2075_v49  ;;  %1955 = vmatprep.subr.bf16.mxu0 %v2164_v1 }
 0x20e   : > { %1969 = vmatprep.subr.bf16.mxu1 %v2164_v1 }
 0x210   : > { %1956 = vmatpush3.bf16.msra.mxu0 %v2082_v56 }
 0x211   : > { %1970 = vmatpush3.bf16.msra.mxu1 %v2077_v51  ;;  %1807 = vmatprep.subr.bf16.mxu0 %v2084_v16 }
 0x212   : > { %1971 = vmatprep.subr.bf16.mxu1 %v2164_v1 }
 0x215   : > { %1972 = vmatpush3.bf16.msra.mxu1 %v2079_v53  ;;  %v1381_v53 = vld [vmem:[%s2662_s8] sm:$0x1] }
 0x216   : > { %1973 = vmatprep.subr.bf16.mxu1 %v2164_v1 }
 0x219   : > { %1974 = vmatpush3.bf16.msra.mxu1 %v2081_v55 }
 0x21a   : > { %1975 = vmatprep.subr.bf16.mxu1 %v2164_v1 }
 0x21d   : > { %1976 = vmatpush3.bf16.msra.mxu1 %v2083_v57 }
 0x2c3   : > { %v952_v58 = vpop.f32.mrb[12].mxu1 }
 0x2c4   : > { %v1915_v59 = vpop.f32.mrb[13].mxu1 }
 0x2c5   : > { %v955_v60 = vpop.f32.mrb[14].mxu1 }
 0x2c6   : > { %v1916_v61 = vpop.f32.mrb[15].mxu1  ;;  %v1019_v62 = vpop.f32.mrb[8].mxu0 }
 0x2c7   : > { %v1020_v63 = vadd.f32 %v1019_v62, %v952_v58  ;;  %v1927_v0 = vpop.f32.mrb[9].mxu0 }
 0x2c8   : > { %v1022_v2 = vpop.f32.mrb[10].mxu0 }
 0x2c9   : > { %v1928_v3 = vpop.f32.mrb[11].mxu0 }
 0x2d3   : > { %v1096_v4 = vpop.f32.mrb[16].mxu1 }
 0x2d4   : > { %v1102_v7 = vadd.f32 %v1096_v4, %v1020_v63  ;;  %v1939_v8 = vpop.f32.mrb[17].mxu1 }
 0x2d5   : > { %v1099_v9 = vpop.f32.mrb[18].mxu1 }
 0x2d6   : > { %v1110_v1 = vadd.f32 %v1688_v5, %v1102_v7  ;;  %v1940_v10 = vpop.f32.mrb[19].mxu1 }
 0x2d8   : > { %v1111_v11 = vmax.f32 %v1110_v1, 0.0 }
 0x2da   : > { %1112 = vst [vmem:[#allocation3] sm:$0xff] %v1111_v11 }
 0x2e1   : > { %v1113_v12 = vld [vmem:[#allocation3] ss:$2 sm:$0xf]  ;;  %v1115_v13 = vld [vmem:[#allocation3 + $0x1] ss:$2 sm:$0xf] }
 0x2e2   : > { %v1116_v14 = vmax.f32 %v1113_v12, %v1115_v13 }
 0x2e4   : > { %v1117_v15 = vpack.c.bf16 %v1116_v14, %v1116_v14 }
 0x2e6   : > { %1958 = vmatmul.mubr.bf16.vlgmr.msra.gmra.mrb[12].mxu0 %v1117_v15  ;;  %1978 = vmatmul.mubr.bf16.vlgmr.msra.gmra.mrb[20].mxu1 %v1117_v15 }
 0x2e7   : > { %1808 = vmatpush3.bf16.msra.mxu0 %v2085_v17 }
 0x2e8   : > { %1809 = vmatprep.subr.bf16.mxu0 %v2086_v18 }
 0x2eb   : > { %1810 = vmatpush3.bf16.msra.mxu0 %v2087_v19 }
 0x2ec   : > { %1811 = vmatprep.subr.bf16.mxu0 %v2088_v20 }
 0x2ef   : > { %1812 = vmatpush3.bf16.msra.mxu0 %v2089_v21 }
 0x2f0   : > { %1813 = vmatprep.subr.bf16.mxu0 %v2090_v22 }
 0x2f3   : > { %1814 = vmatpush3.bf16.msra.mxu0 %v2091_v23 }
 0x2f4   : > { %1815 = vmatprep.subr.bf16.mxu0 %v2092_v24 }
 0x2f7   : > { %1816 = vmatpush3.bf16.msra.mxu0 %v2093_v25 }
 0x2f8   : > { %1817 = vmatprep.subr.bf16.mxu0 %v2094_v26 }
 0x2fb   : > { %1818 = vmatpush3.bf16.msra.mxu0 %v2095_v27 }
 0x2fc   : > { %1819 = vmatprep.subr.bf16.mxu0 %v2096_v28 }
 0x2ff   : > { %1820 = vmatpush3.bf16.msra.mxu0 %v2097_v29 }
 0x300   : > { %1821 = vmatprep.subr.bf16.mxu0 %v2098_v35 }
 0x303   : > { %1822 = vmatpush3.bf16.msra.mxu0 %v2099_v37 }
 0x3b9   : > { %v1216_v30 = vpop.f32.mrb[12].mxu0  ;;  %v1321_v31 = vpop.f32.mrb[20].mxu1 }
 0x3ba   : > { %v1327_v32 = vmax.f32 %v1216_v30, %v1321_v31  ;;  %v1959_v33 = vpop.f32.mrb[13].mxu0  ;;  %v1979_v34 = vpop.f32.mrb[21].mxu1 }
 0x3bb   : > { %v1219_v6 = vpop.f32.mrb[14].mxu0  ;;  %v1324_v36 = vpop.f32.mrb[22].mxu1 }
 0x3bc   : > { %1329 = vst.msk [vmem:[#allocation4] sm:$0xf] %vm1328_vm8, %v1327_v32  ;;  %v1960_v38 = vpop.f32.mrb[15].mxu0  ;;  %v1980_v39 = vpop.f32.mrb[23].mxu1 }
 0x3c3   : > { %v1332_v40 = vld [vmem:[#allocation4 + $0x1] ss:$4 sm:$0x1]  ;;  %v1336_v41 = vld [vmem:[#allocation4 + $0x3] ss:$4 sm:$0x1] }
 0x3c4   : > { %v2023_v42 = vpack.i.bf16 %v1332_v40, %v1336_v41  ;;  %v1330_v46 = vld [vmem:[#allocation4] ss:$4 sm:$0x1]  ;;  %v1334_v47 = vld [vmem:[#allocation4 + $0x2] ss:$4 sm:$0x1] }
 0x3c6   : > { %2024 = vrot.lane.b32.xlu0 %v2023_v42, %s2166_s14  ;;  %s2104_s14 = sshll.u32 %s2167_s13, 4  ;;  %s2105_s14 = int_to_ptr.vmem [resolvable:$false] %s2104_s14 }
 0x3c7   : > { %s2106_s17 = scalar_lea.vmem %s2105_s14, 32  ;;  %p2107_p0 = scmp.lt.s32.totalorder %s2614_s24, %s2105_s14 }
 0x3c8   : > { %p2108_p1 = scmp.lt.s32.totalorder %s2106_s17, %s2100_s29 }
 0x3ca   : > { %p2109_p2 = por %p2108_p1, %p2107_p0 }
 0x3cc   : > { %p2110_p3 = pnand %p2109_p2, %p2103_p13 }
 0x438   : > { %v2025_v43 = vpop.permute.xlu0 %2024 }
 0x439   : > { %v2027_v44 = vunpack.i.h.bf16 %v2025_v43  ;;  %v2026_v45 = vunpack.i.l.bf16 %v2025_v43 }
 0x43b   : > { %v1345_v48 = vsel %vm429_vm2, %v1330_v46, %v2027_v44  ;;  %v1346_v49 = vsel %vm429_vm2, %v1334_v47, %v2026_v45 }
 0x43c   : > { %v1347_v50 = vpack.c.bf16 %v1345_v48, %v1345_v48  ;;  %v1348_v51 = vpack.c.bf16 %v1346_v49, %v1346_v49 }
 0x43e   : > { %1510 = vmatprep.mubr.bf16.mxu0 %v1348_v51 }
 0x43f   : > { %1511 = vmatmul.mubr.bf16.vlgmr.msra.gmra.mrb[16].mxu0 %v1347_v50 }
 0x512   : > { %v1823_v52 = vpop.f32.mrb[16].mxu0 }
 0x513   : > { %v1824_v54 = vpop.f32.mrb[17].mxu0 }
 0x514   : > { %v1825_v55 = vadd.f32 %v1824_v54, %v1823_v52  ;;  %v1826_v56 = vpop.f32.mrb[18].mxu0 }
 0x515   : > { %v1827_v57 = vpop.f32.mrb[19].mxu0 }
 0x516   : > { %v1513_v58 = vadd.f32 %v1825_v55, %v1381_v53 }
 0x518   : > { %1518 = vst [vmem:[%s324_s23] sm:$0x1] %v1513_v58 }
 0x519   : > { %2113 = shalt.err (!%p2110_p3)
}
 0x51a   : > { %s2114_s16 = scalar_lea.hbm %s2612_s27, 16  ;;  %s2118_s23 = scalar_lea.hbm %s2663_s9, 32 }
 0x51b   : > { %p2115_p4 = scmp.ne.s32.totalorder %s2612_s27, %s2114_s16  ;;  %p2119_p9 = scmp.lt.u32.totalorder %s2612_s27, %s2663_s9 }
 0x51c   : > { %p2120_p10 = scmp.lt.u32.totalorder %s2118_s23, %s2114_s16  ;;  %p2122_p12 = scmp.lt.u32.totalorder %s2114_s16, %s2612_s27 }
 0x51d   : > { %p2116_p7 = pnand %p2115_p4, %p2256_p5 }
 0x51e   : > { %p2121_p11 = por %p2120_p10, %p2119_p9 }
 0x51f   : > { %p2117_p8 = pneg %p2116_p7 }
 0x520   : > { %p2123_p13 = por %p2122_p12, %p2121_p11 }
 0x522   : > { %p2124_p0 = pnand %p2123_p13, %p2117_p8 }
 0x524   : > { %2127 = shalt.err (!%p2124_p0)
}
 0x525   : > { %1981 = dma.vmem_to_hbm [thread:$0]  (%p2256_p5), %s2614_s24, 16, %s2612_s27, %s1520_s28  }
 0x526 PF: > { %p1987_p1 = scmp.ge.s32.totalorder %s2162_s12, 2  ;;  %s1544_s29 = sand.u32 1, %s2150_s30  }
 0x527   : > { %s1545_s13 = scalar_lea.sflag [#allocation6], %s1544_s29 }
 0x528   : > { %p1984_p2 = pnand %p1987_p1, %p2260_p6 }
 0x52a   : > { %2145 = dma.done.wait (!%p1984_p2), %s1545_s13, 16  }
 0x52b   : > { %2147 = vsyncadd (!%p1984_p2), %s1545_s13, 4294967280  ;;  %p19_p3 = scmp.ge.s32.totalorder %s2243_s15, 4   ;;  %s2670_s30 = smov %s2154_s10 }
 0x52c   : > { %s2671_s10 = smov %s2158_s11  ;;  %s2672_s11 = smov %s2254_s18 }
 0x52d   : > { %s2673_s12 = smov %s2243_s15  ;;  %21 = sbr.rel (!%p19_p3) target bundleno = 3 (0x3), region = 102 }
 0x534   :  { %1549 = vsyncpa [#allocation6], 1 }
 0x535   :  { %1551 = vsyncpa [#allocation6 + $0x1], 1 }

</bundles_post_ra>
